<compile_context>
chip_gen: v5e
topology: v5e:2x2
jax: 0.10.0
libtpu: 0.0.40
codegen_flags: <defaults>
</compile_context>

<pallas_src>
import jax
import jax.numpy as jnp
import numpy as np
from jax import lax
from jax.experimental import pallas as pl
from jax.experimental.pallas import tpu as pltpu


def _round_up(x: int, m: int) -> int:
    return ((x + m - 1) // m) * m


def _pick_batch_tile(bp: int) -> int:
    """bp is a multiple of 8.  Pick a sublane-aligned tile; when bp >= 16 keep
    >= 2 grid programs so the 'parallel' axis can use both v7x TensorCores."""
    if bp <= 8:
        return bp
    cap = min(256, bp // 2)
    tb = (cap // 8) * 8
    while tb > 8 and bp % tb != 0:
        tb -= 8
    return max(tb, 8)


def _pick_vocab_tile(vp: int) -> int:
    """vp is a multiple of 128.  <=512-row blocks keep the streamed-table
    pipeline within VMEM budgets on every generation (v5e/v6e/v7x)."""
    for tv in (512, 384, 256, 128):
        if vp % tv == 0:
            return tv
    return 128


def _single_buffered(shape, index_map):
    """Constant-index operand: request single buffering (halves its resident
    VMEM — matters most on v7x's 64 MiB).  Falls back cleanly if the installed
    jax has no pipeline_mode kwarg."""
    try:
        return pl.BlockSpec(shape, index_map, pipeline_mode=pl.Buffered(1))
    except (TypeError, AttributeError):
        return pl.BlockSpec(shape, index_map)


def _fused_cls_kernel(ids_ref, ft_ref, beff_ref, out_ref, acc_ref):
    """Fused head:  per-vocab-block histogram -> GEMM vs (emb @ W) -> + bias.

    grid     : (batch_tiles [parallel], vocab_tiles [arbitrary])
    ids_ref  : (TB, S)   int32     token ids for this batch tile
    ft_ref   : (TV, Cp)  bf16/f32  vocab-block k of the fused (emb @ W) table
    beff_ref : (1, Cp)   f32       effective bias (mean positional term folded in)
    out_ref  : (TB, Cp)  f32       mean-over-sequence logits (padded classes)
    acc_ref  : (TB, Cp)  f32       scratch accumulator, resident across vocab axis
    """
    k = pl.program_id(1)

    @pl.when(k == 0)
    def _():
        acc_ref[...] = jnp.zeros_like(acc_ref)

    ids = ids_ref[...]                                  # (TB, S) int32
    TB, S = ids.shape
    TV = ft_ref.shape[0]
    v_base = k * TV

    # Token histogram for this vocab block, built as an S-step accumulation
    # over a (TB, TV) buffer — no (TB, S, TV) 3-D intermediate, pure VPU adds.
    # NOTE: ids outside [0, V) silently contribute nothing (a real gather
    # would error); the mean still divides by S.
    lane_ids = lax.broadcasted_iota(jnp.int32, (TB, TV), 1) + v_base
    hist = jnp.zeros((TB, TV), jnp.float32)
    for s in range(S):                                  # S is small & static
        hist = hist + jnp.where(ids[:, s:s + 1] == lane_ids, 1.0, 0.0)
    probs = hist * (1.0 / S)                            # -> mean over sequence

    # mean_s(emb[ids]) @ W restricted to this vocab block, accumulated on MXU.
    acc_ref[...] += jnp.dot(probs.astype(ft_ref.dtype), ft_ref[...],
                            preferred_element_type=jnp.float32)

    @pl.when(k == pl.num_programs(1) - 1)
    def _():
        out_ref[...] = acc_ref[...] + beff_ref[...]


def make_positional_table(embedding_num: int, max_len: int = 3000) -> jnp.ndarray:
    """Reproduces Positional.__init__ exactly (positions start at 1)."""
    pos = np.zeros((max_len, embedding_num), dtype=np.float32)
    t = np.arange(1, max_len + 1, dtype=np.float32)[:, None]
    w_i = 1.0 / (10000.0 ** (np.arange(0, embedding_num, 2, dtype=np.float32)
                             / embedding_num))
    w_i_t = w_i[None, :] * t
    pos[:, 0::2] = np.sin(w_i_t)
    pos[:, 1::2] = np.cos(w_i_t)
    return jnp.asarray(pos)


def prepare_params(emb_table, pos_table, w_ec, bias, seq_len,
                   table_dtype=jnp.bfloat16):
    """One-time weight preparation (hoisted out of the per-call path).

    Returns:
      fused_p : (Vp, Cp) lane-dense zero-padded (emb @ W) table in table_dtype
      b_eff_p : (1, Cp)  f32 effective bias = mean(pos[:S]) @ W + b (padded)
    """
    V, E = emb_table.shape
    C = w_ec.shape[1]
    Vp = _round_up(V, 128)
    Cp = _round_up(C, 128)

    fused = emb_table.astype(jnp.float32) @ w_ec.astype(jnp.float32)   # (V, C)
    fused_p = jnp.zeros((Vp, Cp), jnp.float32).at[:V, :C].set(fused)
    fused_p = fused_p.astype(table_dtype)

    pos_mean = jnp.mean(pos_table[:seq_len, :], axis=0)                # (E,)
    b_eff = pos_mean @ w_ec + bias                                     # (C,)
    b_eff_p = jnp.zeros((1, Cp), jnp.float32).at[0, :C].set(b_eff)
    return fused_p, b_eff_p


def model_forward(ids, fused_p, b_eff_p, num_classes):
    """ids: (B, S) int32 -> (argmax (B,) int32, mean logits (B, C) f32)."""
    B, S = ids.shape
    Vp, Cp = fused_p.shape

    # Pad batch to a sublane multiple (padding rows use token 0; sliced off).
    Bp = _round_up(max(B, 8), 8)
    if Bp != B:
        ids = jnp.concatenate(
            [ids, jnp.zeros((Bp - B, S), ids.dtype)], axis=0)

    TB = _pick_batch_tile(Bp)
    TV = _pick_vocab_tile(Vp)
    n_b, n_v = Bp // TB, Vp // TV

    # Fused table: single-buffer it when it fits in one block (constant index);
    # otherwise leave it double-buffered so the streamed vocab blocks pipeline.
    if n_v == 1:
        table_spec = _single_buffered((TV, Cp), lambda i, k: (k, 0))
    else:
        table_spec = pl.BlockSpec((TV, Cp), lambda i, k: (k, 0))
    bias_spec = _single_buffered((1, Cp), lambda i, k: (0, 0))

    logits_padded = pl.pallas_call(
        _fused_cls_kernel,
        out_shape=jax.ShapeDtypeStruct((Bp, Cp), jnp.float32),
        grid_spec=pltpu.PrefetchScalarGridSpec(
            num_scalar_prefetch=0,
            grid=(n_b, n_v),
            in_specs=[
                pl.BlockSpec((TB, S), lambda i, k: (i, 0)),   # token ids
                table_spec,                                   # fused emb @ W
                bias_spec,                                    # effective bias
            ],
            out_specs=pl.BlockSpec((TB, Cp), lambda i, k: (i, 0)),
            scratch_shapes=[pltpu.VMEM((TB, Cp), jnp.float32)],
        ),
        compiler_params=pltpu.CompilerParams(
            dimension_semantics=("parallel", "arbitrary")),
    )(ids, fused_p, b_eff_p)

    mean_logits = logits_padded[:B, :num_classes]                      # (B, C)
    pred = jnp.argmax(mean_logits, axis=-1).astype(jnp.int32)
    return pred, mean_logits


def reference_forward(ids, emb_table, pos_table, w_ec, bias):
    """Pure-JAX reference mirroring the original PyTorch forward exactly."""
    x_emb = jnp.take(emb_table, ids, axis=0)
    x_emb = x_emb + pos_table[: ids.shape[1], :][None]
    pre = x_emb @ w_ec + bias[None, None, :]
    pre = jnp.mean(pre, axis=1)
    return jnp.argmax(pre, axis=-1).astype(jnp.int32), pre


def _check_argmax(pred, ref_logits, margin_tol):
    """Assert argmax agreement only where the reference top-2 margin exceeds
    the numerical tolerance (reassociation / bf16 can flip near-ties)."""
    ref_logits = np.asarray(ref_logits)
    ref_idx = np.argmax(ref_logits, axis=-1)
    srt = np.sort(ref_logits, axis=-1)
    decisive = (srt[:, -1] - srt[:, -2]) > margin_tol
    np.testing.assert_array_equal(np.asarray(pred)[decisive], ref_idx[decisive])


if __name__ == "__main__":
    # Small shapes consistent with the module: word_size=50, embedding=32,
    # class_num=4, batch=2, seq_len=8.
    WORD_SIZE, EMB, CLASSES = 50, 32, 4
    B, S = 2, 8

    key = jax.random.PRNGKey(0)
    k_emb, k_w, k_b, k_ids = jax.random.split(key, 4)

    emb_table = jax.random.normal(k_emb, (WORD_SIZE, EMB), dtype=jnp.float32)
    # torch Linear weight is (C, E); we store its transpose (E, C).
    w_ec = (jax.random.normal(k_w, (CLASSES, EMB), dtype=jnp.float32) * 0.1).T
    bias = jax.random.normal(k_b, (CLASSES,), dtype=jnp.float32) * 0.1
    ids = jax.random.randint(k_ids, (B, S), 0, WORD_SIZE, dtype=jnp.int32)

    pos_table = make_positional_table(EMB, max_len=3000)
    ref_idx, ref_logits = reference_forward(ids, emb_table, pos_table, w_ec, bias)

    # --- f32 fused table: tight numerical check against the reference -------
    fused_f32, beff_f32 = prepare_params(emb_table, pos_table, w_ec, bias, S,
                                         table_dtype=jnp.float32)
    pred32, logits32 = model_forward(ids, fused_f32, beff_f32, CLASSES)
    jax.block_until_ready((pred32, logits32))
    np.testing.assert_allclose(np.asarray(logits32), np.asarray(ref_logits),
                               rtol=1e-5, atol=1e-5)
    _check_argmax(pred32, ref_logits, margin_tol=1e-3)

    # --- bf16 fused table (production setting): halves table DMA / VMEM -----
    fused_bf16, beff_bf16 = prepare_params(emb_table, pos_table, w_ec, bias, S,
                                           table_dtype=jnp.bfloat16)
    pred16, logits16 = model_forward(ids, fused_bf16, beff_bf16, CLASSES)
    jax.block_until_ready((pred16, logits16))
    np.testing.assert_allclose(np.asarray(logits16), np.asarray(ref_logits),
                               rtol=2e-2, atol=2e-2)
    _check_argmax(pred16, ref_logits, margin_tol=5e-2)

    # TODO(synk): training branch (CrossEntropyLoss when label is not None) is
    # not implemented; this kernel covers the inference forward only.
    print("KERNEL_OK")
</pallas_src>

<mosaic_0001>
module attributes {stable_mosaic.version = 11 : i64} {
  func.func @_fused_cls_kernel(%arg0: i32, %arg1: i32, %arg2: memref<8x8xi32, #tpu.memory_space<vmem>>, %arg3: memref<128x128xf32, #tpu.memory_space<vmem>>, %arg4: memref<1x128xf32, #tpu.memory_space<vmem>>, %arg5: memref<8x128xf32, #tpu.memory_space<vmem>>, %arg6: memref<8x128xf32, #tpu.memory_space<vmem>>) attributes {dimension_semantics = [#tpu.dimension_semantics<parallel>, #tpu.dimension_semantics<arbitrary>], iteration_bounds = array<i64: 1, 1>, scalar_prefetch = 0 : i64, scratch_operands = 1 : i64, tpu.core_type = #tpu.core_type<tc>, window_params = [{transform_indices = @transform_0, window_bounds = array<i64: 8, 8>}, {pipeline_mode = #tpu.pipeline_mode<synchronous>, transform_indices = @transform_1, window_bounds = array<i64: 128, 128>}, {pipeline_mode = #tpu.pipeline_mode<synchronous>, transform_indices = @transform_2, window_bounds = array<i64: 1, 128>}, {transform_indices = @transform_3, window_bounds = array<i64: 8, 128>}]} {
    %c0_i32 = arith.constant 0 : i32
    %0 = arith.cmpi eq, %arg1, %c0_i32 : i32
    %1 = arith.extui %0 : i1 to i32
    %c0_i32_0 = arith.constant 0 : i32
    %2 = arith.cmpi ne, %1, %c0_i32_0 : i32
    scf.if %2 {
      %cst_28 = arith.constant 0.000000e+00 : f32
      %75 = vector.broadcast %cst_28 : f32 to vector<8x128xf32>
      %c0_29 = arith.constant 0 : index
      %c0_30 = arith.constant 0 : index
      %76 = vector.load %arg6[%c0_29, %c0_30] : memref<8x128xf32, #tpu.memory_space<vmem>>, vector<8x128xf32>
      tpu.vector_store %arg6[%c0_29, %c0_30], %75 {strides = array<i32>} : memref<8x128xf32, #tpu.memory_space<vmem>>, vector<8x128xf32>,
    } else {
    }
    %c0 = arith.constant 0 : index
    %c0_1 = arith.constant 0 : index
    %3 = vector.load %arg2[%c0, %c0_1] : memref<8x8xi32, #tpu.memory_space<vmem>>, vector<8x8xi32>
    %c128_i32 = arith.constant 128 : i32
    %4 = arith.muli %arg1, %c128_i32 : i32
    %5 = tpu.iota {dimensions = array<i32: 1>} : vector<8x128xi32>
    %6 = vector.broadcast %4 : i32 to vector<8x128xi32>
    %7 = arith.addi %5, %6 : vector<8x128xi32>
    %cst = arith.constant 0.000000e+00 : f32
    %8 = vector.broadcast %cst : f32 to vector<8x128xf32>
    %9 = vector.extract_strided_slice %3 {offsets = [0, 0], sizes = [8, 1], strides = [1, 1]} : vector<8x8xi32> to vector<8x1xi32>
    %10 = vector.broadcast %9 : vector<8x1xi32> to vector<8x128xi32>
    %11 = arith.cmpi eq, %10, %7 : vector<8x128xi32>
    %cst_2 = arith.constant 1.000000e+00 : f32
    %cst_3 = arith.constant 0.000000e+00 : f32
    %12 = vector.broadcast %cst_2 : f32 to vector<8x128xf32>
    %13 = vector.broadcast %cst_3 : f32 to vector<8x128xf32>
    %14 = arith.select %11, %12, %13 : vector<8x128xi1>, vector<8x128xf32>
    %15 = arith.addf %8, %14 : vector<8x128xf32>
    %16 = vector.extract_strided_slice %3 {offsets = [0, 1], sizes = [8, 1], strides = [1, 1]} : vector<8x8xi32> to vector<8x1xi32>
    %17 = vector.broadcast %16 : vector<8x1xi32> to vector<8x128xi32>
    %18 = arith.cmpi eq, %17, %7 : vector<8x128xi32>
    %cst_4 = arith.constant 1.000000e+00 : f32
    %cst_5 = arith.constant 0.000000e+00 : f32
    %19 = vector.broadcast %cst_4 : f32 to vector<8x128xf32>
    %20 = vector.broadcast %cst_5 : f32 to vector<8x128xf32>
    %21 = arith.select %18, %19, %20 : vector<8x128xi1>, vector<8x128xf32>
    %22 = arith.addf %15, %21 : vector<8x128xf32>
    %23 = vector.extract_strided_slice %3 {offsets = [0, 2], sizes = [8, 1], strides = [1, 1]} : vector<8x8xi32> to vector<8x1xi32>
    %24 = vector.broadcast %23 : vector<8x1xi32> to vector<8x128xi32>
    %25 = arith.cmpi eq, %24, %7 : vector<8x128xi32>
    %cst_6 = arith.constant 1.000000e+00 : f32
    %cst_7 = arith.constant 0.000000e+00 : f32
    %26 = vector.broadcast %cst_6 : f32 to vector<8x128xf32>
    %27 = vector.broadcast %cst_7 : f32 to vector<8x128xf32>
    %28 = arith.select %25, %26, %27 : vector<8x128xi1>, vector<8x128xf32>
    %29 = arith.addf %22, %28 : vector<8x128xf32>
    %30 = vector.extract_strided_slice %3 {offsets = [0, 3], sizes = [8, 1], strides = [1, 1]} : vector<8x8xi32> to vector<8x1xi32>
    %31 = vector.broadcast %30 : vector<8x1xi32> to vector<8x128xi32>
    %32 = arith.cmpi eq, %31, %7 : vector<8x128xi32>
    %cst_8 = arith.constant 1.000000e+00 : f32
    %cst_9 = arith.constant 0.000000e+00 : f32
    %33 = vector.broadcast %cst_8 : f32 to vector<8x128xf32>
    %34 = vector.broadcast %cst_9 : f32 to vector<8x128xf32>
    %35 = arith.select %32, %33, %34 : vector<8x128xi1>, vector<8x128xf32>
    %36 = arith.addf %29, %35 : vector<8x128xf32>
    %37 = vector.extract_strided_slice %3 {offsets = [0, 4], sizes = [8, 1], strides = [1, 1]} : vector<8x8xi32> to vector<8x1xi32>
    %38 = vector.broadcast %37 : vector<8x1xi32> to vector<8x128xi32>
    %39 = arith.cmpi eq, %38, %7 : vector<8x128xi32>
    %cst_10 = arith.constant 1.000000e+00 : f32
    %cst_11 = arith.constant 0.000000e+00 : f32
    %40 = vector.broadcast %cst_10 : f32 to vector<8x128xf32>
    %41 = vector.broadcast %cst_11 : f32 to vector<8x128xf32>
    %42 = arith.select %39, %40, %41 : vector<8x128xi1>, vector<8x128xf32>
    %43 = arith.addf %36, %42 : vector<8x128xf32>
    %44 = vector.extract_strided_slice %3 {offsets = [0, 5], sizes = [8, 1], strides = [1, 1]} : vector<8x8xi32> to vector<8x1xi32>
    %45 = vector.broadcast %44 : vector<8x1xi32> to vector<8x128xi32>
    %46 = arith.cmpi eq, %45, %7 : vector<8x128xi32>
    %cst_12 = arith.constant 1.000000e+00 : f32
    %cst_13 = arith.constant 0.000000e+00 : f32
    %47 = vector.broadcast %cst_12 : f32 to vector<8x128xf32>
    %48 = vector.broadcast %cst_13 : f32 to vector<8x128xf32>
    %49 = arith.select %46, %47, %48 : vector<8x128xi1>, vector<8x128xf32>
    %50 = arith.addf %43, %49 : vector<8x128xf32>
    %51 = vector.extract_strided_slice %3 {offsets = [0, 6], sizes = [8, 1], strides = [1, 1]} : vector<8x8xi32> to vector<8x1xi32>
    %52 = vector.broadcast %51 : vector<8x1xi32> to vector<8x128xi32>
    %53 = arith.cmpi eq, %52, %7 : vector<8x128xi32>
    %cst_14 = arith.constant 1.000000e+00 : f32
    %cst_15 = arith.constant 0.000000e+00 : f32
    %54 = vector.broadcast %cst_14 : f32 to vector<8x128xf32>
    %55 = vector.broadcast %cst_15 : f32 to vector<8x128xf32>
    %56 = arith.select %53, %54, %55 : vector<8x128xi1>, vector<8x128xf32>
    %57 = arith.addf %50, %56 : vector<8x128xf32>
    %58 = vector.extract_strided_slice %3 {offsets = [0, 7], sizes = [8, 1], strides = [1, 1]} : vector<8x8xi32> to vector<8x1xi32>
    %59 = vector.broadcast %58 : vector<8x1xi32> to vector<8x128xi32>
    %60 = arith.cmpi eq, %59, %7 : vector<8x128xi32>
    %cst_16 = arith.constant 1.000000e+00 : f32
    %cst_17 = arith.constant 0.000000e+00 : f32
    %61 = vector.broadcast %cst_16 : f32 to vector<8x128xf32>
    %62 = vector.broadcast %cst_17 : f32 to vector<8x128xf32>
    %63 = arith.select %60, %61, %62 : vector<8x128xi1>, vector<8x128xf32>
    %64 = arith.addf %57, %63 : vector<8x128xf32>
    %cst_18 = arith.constant 1.250000e-01 : f32
    %65 = vector.broadcast %cst_18 : f32 to vector<8x128xf32>
    %66 = arith.mulf %64, %65 : vector<8x128xf32>
    %c0_19 = arith.constant 0 : index
    %c0_20 = arith.constant 0 : index
    %67 = vector.load %arg6[%c0_19, %c0_20] : memref<8x128xf32, #tpu.memory_space<vmem>>, vector<8x128xf32>
    %c0_21 = arith.constant 0 : index
    %c0_22 = arith.constant 0 : index
    %68 = vector.load %arg3[%c0_21, %c0_22] : memref<128x128xf32, #tpu.memory_space<vmem>>, vector<128x128xf32>
    %cst_23 = arith.constant dense<0.000000e+00> : vector<8x128xf32>
    %69 = tpu.matmul %66, %68, %cst_23 {dimension_numbers = #tpu.dot_dimension_numbers<[1], [0], [0], [1], [0, 0, 1, 1], [], []>} : vector<8x128xf32>, vector<128x128xf32>, vector<8x128xf32> -> vector<8x128xf32>
    %70 = arith.addf %67, %69 : vector<8x128xf32>
    %c0_24 = arith.constant 0 : index
    %c0_25 = arith.constant 0 : index
    %71 = vector.load %arg6[%c0_24, %c0_25] : memref<8x128xf32, #tpu.memory_space<vmem>>, vector<8x128xf32>
    tpu.vector_store %arg6[%c0_24, %c0_25], %70 {strides = array<i32>} : memref<8x128xf32, #tpu.memory_space<vmem>>, vector<8x128xf32>,
    %c0_i32_26 = arith.constant 0 : i32
    %72 = arith.cmpi eq, %arg1, %c0_i32_26 : i32
    %73 = arith.extui %72 : i1 to i32
    %c0_i32_27 = arith.constant 0 : i32
    %74 = arith.cmpi ne, %73, %c0_i32_27 : i32
    scf.if %74 {
      %c0_28 = arith.constant 0 : index
      %c0_29 = arith.constant 0 : index
      %75 = vector.load %arg6[%c0_28, %c0_29] : memref<8x128xf32, #tpu.memory_space<vmem>>, vector<8x128xf32>
      %c0_30 = arith.constant 0 : index
      %c0_31 = arith.constant 0 : index
      %76 = vector.load %arg4[%c0_30, %c0_31] : memref<1x128xf32, #tpu.memory_space<vmem>>, vector<1x128xf32>
      %77 = vector.broadcast %76 : vector<1x128xf32> to vector<8x128xf32>
      %78 = arith.addf %75, %77 : vector<8x128xf32>
      %c0_32 = arith.constant 0 : index
      %c0_33 = arith.constant 0 : index
      %79 = vector.load %arg5[%c0_32, %c0_33] : memref<8x128xf32, #tpu.memory_space<vmem>>, vector<8x128xf32>
      tpu.vector_store %arg5[%c0_32, %c0_33], %78 {strides = array<i32>} : memref<8x128xf32, #tpu.memory_space<vmem>>, vector<8x128xf32>,
    } else {
    }
    return
  }
  func.func @transform_0(%arg0: i32, %arg1: i32) -> (i32, i32) {
    %c0_i32 = arith.constant 0 : i32
    %c0_i32_0 = arith.constant 0 : i32
    return %arg0, %c0_i32 : i32, i32
  }
  func.func @transform_1(%arg0: i32, %arg1: i32) -> (i32, i32) {
    %c0_i32 = arith.constant 0 : i32
    %c0_i32_0 = arith.constant 0 : i32
    return %arg1, %c0_i32 : i32, i32
  }
  func.func @transform_2(%arg0: i32, %arg1: i32) -> (i32, i32) {
    %c0_i32 = arith.constant 0 : i32
    %c0_i32_0 = arith.constant 0 : i32
    %c0_i32_1 = arith.constant 0 : i32
    return %c0_i32, %c0_i32_0 : i32, i32
  }
  func.func @transform_3(%arg0: i32, %arg1: i32) -> (i32, i32) {
    %c0_i32 = arith.constant 0 : i32
    %c0_i32_0 = arith.constant 0 : i32
    return %arg0, %c0_i32 : i32, i32
  }
}

</mosaic_0001>

<bundles_post_ra>
// kernel: tpu_custom_call.1
= control target key start
LH: loop header
LB: loop body
LE: loop exit
PB: predicated region body
PF: predicated region fallthrough
CT: control target
= control target key end

     0   :  { %8 = vsyncpa [#allocation4], 0  ;;  %s320_s0 = inlined_call_operand.hbm [shape: s32[8,8], index: 0, kind: input, shape index: {}]   ;;  %s321_s1 = inlined_call_operand.hbm [shape: f32[128,128], index: 1, kind: input, shape index: {}]   ;;  %s322_s2 = inlined_call_operand.vmem [shape: f32[1,128], index: 2, kind: input, shape index: {}]   ;;  %s323_s3 = inlined_call_operand.hbm [shape: f32[8,128], index: 3, kind: output, shape index: {}]  }
   0x1   :  { %9 = vsyncpa [#allocation7], 0 }
   0x2   :  { %10 = vsyncpa [#allocation5], 0  ;;  %s16_s14 = sshll.u32 %s320_s0, 4  ;;  %s274_s15 = smov [#allocation3]   ;;  %s17_s14 = int_to_ptr.hbm [resolvable:$true] %s16_s14 }
   0x3   :  { %s18_s16 = sshll.u32 %s274_s15, 4  ;;  %s26_s19 = sshll.u32 %s321_s1, 4  ;;  %s19_s16 = int_to_ptr.vmem [resolvable:$true] %s18_s16  ;;  %s27_s19 = int_to_ptr.hbm [resolvable:$true] %s26_s19 }
   0x4   :  { %21 = dma.hbm_to_vmem [thread:$0]  %s17_s14, 128, %s19_s16, [#allocation4]  }
   0x5   :  { %s275_s20 = smov [#allocation6]   ;;  %s276_s22 = smov 128  }
   0x6   :  { %s28_s21 = sshll.u32 %s275_s20, 4  ;;  %s277_s23 = smov 8   ;;  %s29_s21 = int_to_ptr.vmem [resolvable:$true] %s28_s21 }
   0x7   :  { %34 = dma.hbm_to_vmem [thread:$0]  %s27_s19, 2048, %s29_s21, [#allocation7], %s276_s22, %s276_s22, %s277_s23  }
   0x8   :  { %268 = dma.done.wait [#allocation4], 128  }
   0x9   :  { %269 = vsyncadd [#allocation4], 4294967168 }
   0xa   :  { %270 = dma.done.wait [#allocation7], 2048  }
   0xb   :  { %271 = vsyncadd [#allocation7], 4294965248  ;;  %v278_v0 = vmov 0   ;;  %v279_v1 = vmov 2   ;;  %v280_v2 = vmov 4   ;;  %v50_v3 = vld [vmem:[#allocation3] sm:$0xff]  ;;  %v52_v26 = vlaneseq }
   0xc   :  { %186 = vset.pattern.permute.xlu0 %v278_v0  ;;  %188 = vset.pattern.permute.xlu1 %v279_v1  ;;  %v121_v4 = vld [vmem:[#allocation6 + $0x78] sm:$0xff]  ;;  %v120_v5 = vld [vmem:[#allocation6 + $0x70] sm:$0xff]  ;;  %v281_v6 = vmov 1   ;;  %v282_v7 = vmov 3   ;;  %v283_v8 = vmov 5   ;;  %v284_v9 = vmov 6  }
   0xd   :  { %190 = vset.pattern.permute.xlu2 %v280_v2  ;;  %57 = vperm.xlu0 %186, %v50_v3   ;;  %v285_v10 = vmov 7   ;;  %v119_v11 = vld [vmem:[#allocation6 + $0x68] sm:$0xff]  ;;  %v118_v12 = vld [vmem:[#allocation6 + $0x60] sm:$0xff]  ;;  %v117_v13 = vld [vmem:[#allocation6 + $0x58] sm:$0xff]  ;;  %v53_v29 = vand.u32 127, %v52_v26  ;;  %v286_v33 = vmov 0.0  }
   0xe   :  { %69 = vperm.xlu1 %188, %v50_v3   ;;  %81 = vperm.xlu2 %190, %v50_v3   ;;  %v116_v14 = vld [vmem:[#allocation6 + $0x50] sm:$0xff]  ;;  %v115_v15 = vld [vmem:[#allocation6 + $0x48] sm:$0xff]  ;;  %v114_v16 = vld [vmem:[#allocation6 + $0x40] sm:$0xff]  ;;  %s287_s24 = smov [#allocation8]   ;;  %s161_s28 = sshll.u32 %s323_s3, 4  ;;  %s162_s28 = int_to_ptr.hbm [resolvable:$true] %s161_s28 }
   0xf   :  { %122 = vmatpush.msra.mxu0 %v121_v4  ;;  %v113_v17 = vld [vmem:[#allocation6 + $0x38] sm:$0xff]  ;;  %v112_v18 = vld [vmem:[#allocation6 + $0x30] sm:$0xff]  ;;  %v111_v19 = vld [vmem:[#allocation6 + $0x28] sm:$0xff]  ;;  %s159_s25 = sshll.u32 %s287_s24, 4  ;;  %s160_s25 = int_to_ptr.vmem [resolvable:$true] %s159_s25 }
  0x10   :  { %v110_v20 = vld [vmem:[#allocation6 + $0x20] sm:$0xff]  ;;  %v109_v21 = vld [vmem:[#allocation6 + $0x18] sm:$0xff]  ;;  %v108_v22 = vld [vmem:[#allocation6 + $0x10] sm:$0xff] }
  0x11   :  { %123 = vmatpush.msra.mxu0 %v120_v5  ;;  %v107_v23 = vld [vmem:[#allocation6 + $0x8] sm:$0xff]  ;;  %v106_v24 = vld [vmem:[#allocation6] sm:$0xff]  ;;  %v195_v52 = vld [vmem:[%s322_s2] ss:$0 sm:$0xff] }
  0x13   :  { %124 = vmatpush.msra.mxu0 %v119_v11 }
  0x15   :  { %187 = vset.pattern.permute.xlu0 %v281_v6  ;;  %125 = vmatpush.msra.mxu0 %v118_v12 }
  0x16   :  { %189 = vset.pattern.permute.xlu1 %v282_v7  ;;  %63 = vperm.xlu0 %187, %v50_v3  }
  0x17   :  { %75 = vperm.xlu1 %189, %v50_v3   ;;  %191 = vset.pattern.permute.xlu2 %v283_v8 }
  0x18   :  { %87 = vperm.xlu2 %191, %v50_v3   ;;  %126 = vmatpush.msra.mxu0 %v117_v13 }
  0x1a   :  { %127 = vmatpush.msra.mxu0 %v116_v14 }
  0x1c   :  { %128 = vmatpush.msra.mxu0 %v115_v15 }
  0x1e   :  { %194 = vset.pattern.permute.xlu0 %v285_v10  ;;  %129 = vmatpush.msra.mxu0 %v114_v16 }
  0x1f   :  { %192 = vset.pattern.permute.xlu1 %v284_v9 }
  0x20   :  { %93 = vperm.xlu1 %192, %v50_v3   ;;  %193 = vset.pattern.permute.xlu2 %v285_v10 }
  0x21   :  { %99 = vperm.xlu2 %193, %v50_v3   ;;  %130 = vmatpush.msra.mxu0 %v113_v17 }
  0x23   :  { %131 = vmatpush.msra.mxu0 %v112_v18 }
  0x25   :  { %132 = vmatpush.msra.mxu0 %v111_v19 }
  0x27   :  { %133 = vmatpush.msra.mxu0 %v110_v20 }
  0x29   :  { %134 = vmatpush.msra.mxu0 %v109_v21 }
  0x2b   :  { %135 = vmatpush.msra.mxu0 %v108_v22 }
  0x2d   :  { %136 = vmatpush.msra.mxu0 %v107_v23 }
  0x2f   :  { %137 = vmatpush.msra.mxu0 %v106_v24 }
  0x68   :  { %v82_v25 = vpop.permute.xlu2 %81 }
  0x69   :  { %vm83_vm4 = vcmp.eq.s32.totalorder %v82_v25, %v53_v29 }
  0x6a   :  { %v84_v42 = vsel %vm83_vm4, 1.0, %v286_v33 }
  0x72   :  { %v88_v30 = vpop.permute.xlu2 %87 }
  0x73   :  { %vm89_vm5 = vcmp.eq.s32.totalorder %v88_v30, %v53_v29 }
  0x74   :  { %v90_v45 = vsel %vm89_vm5, 1.0, %v286_v33 }
  0x7b   :  { %v100_v40 = vpop.permute.xlu2 %99 }
  0x7c   :  { %vm101_vm6 = vcmp.eq.s32.totalorder %v100_v40, %v53_v29 }
  0x7d   :  { %v102_v48 = vsel %vm101_vm6, 1.0, %v286_v33 }
  0x7f   :  { %v58_v27 = vpop.permute.xlu0 %57 }
  0x80   :  { %v70_v28 = vpop.permute.xlu1 %69  ;;  %vm59_vm0 = vcmp.eq.s32.totalorder %v58_v27, %v53_v29 }
  0x81   :  { %vm71_vm1 = vcmp.eq.s32.totalorder %v70_v28, %v53_v29  ;;  %v60_v34 = vsel %vm59_vm0, 1.0, %v286_v33 }
  0x82   :  { %v72_v37 = vsel %vm71_vm1, 1.0, %v286_v33 }
  0x88   :  { %v64_v31 = vpop.permute.xlu0 %63 }
  0x89   :  { %v76_v32 = vpop.permute.xlu1 %75  ;;  %vm65_vm2 = vcmp.eq.s32.totalorder %v64_v31, %v53_v29 }
  0x8a   :  { %v66_v35 = vsel %vm65_vm2, 1.0, %v286_v33  ;;  %vm77_vm3 = vcmp.eq.s32.totalorder %v76_v32, %v53_v29 }
  0x8b   :  { %v67_v36 = vadd.f32 %v66_v35, %v60_v34  ;;  %v78_v39 = vsel %vm77_vm3, 1.0, %v286_v33 }
  0x8d   :  { %v73_v38 = vadd.f32 %v72_v37, %v67_v36 }
  0x8f   :  { %v79_v41 = vadd.f32 %v78_v39, %v73_v38 }
  0x91   :  { %v85_v43 = vadd.f32 %v84_v42, %v79_v41 }
  0x92   :  { %v94_v44 = vpop.permute.xlu1 %93 }
  0x93   :  { %vm95_vm7 = vcmp.eq.s32.totalorder %v94_v44, %v53_v29  ;;  %v91_v46 = vadd.f32 %v90_v45, %v85_v43 }
  0x94   :  { %v96_v47 = vsel %vm95_vm7, 1.0, %v286_v33 }
  0x95   :  { %v97_v49 = vadd.f32 %v96_v47, %v91_v46 }
  0x97   :  { %v103_v50 = vadd.f32 %v102_v48, %v97_v49 }
  0x99   :  { %v104_v51 = vmul.f32 0.125, %v103_v50 }
  0x9b   :  { %138 = vmatmul.f32.vlgmr.msra.gmra.mxu0 %v104_v51 }
 0x118   :  { %v139_v53 = vpop.f32.mrf.mxu0 }
 0x119   :  { %v152_v54 = vadd.f32 %v195_v52, %v139_v53 }
 0x11b   :  { %153 = vst [vmem:[#allocation8] sm:$0xff] %v152_v54 }
 0x11c   :  { %164 = dma.vmem_to_hbm [thread:$0]  %s160_s25, 128, %s162_s28, [#allocation5]  }
 0x11d   :  { %272 = dma.done.wait [#allocation5], 128  }
 0x11e   :  { %273 = vsyncadd [#allocation5], 4294967168 }
 0x11f   :  { %169 = vsyncpa [#allocation4], 1 }
 0x120   :  { %170 = vsyncpa [#allocation7], 1 }
 0x121   :  { %171 = vsyncpa [#allocation5], 1 }

</bundles_post_ra>
